<compile_context>
chip_gen: v7x
topology: tpu7x:2x2x1
jax: 0.10.0
libtpu: 0.0.40
codegen_flags: <defaults>
</compile_context>

<pallas_src>
import jax
import jax.numpy as jnp
from jax.experimental import pallas as pl
from jax.experimental.pallas import tpu as pltpu


def _sap_kernel(x_ref, w_ref, b_ref, o_ref):
    # x_ref : (BN, T, H)   VMEM, native dtype (f32 or bf16)
    # w_ref : (1, 1, H)    VMEM, attention projection weight
    # b_ref : (1, 1)       SMEM, attention projection bias (scalar)
    # o_ref : (BN, 1, H)   VMEM, pooled output
    bn, t, h = x_ref.shape
    x = x_ref[...]                                              # keep native dtype
    w = jnp.broadcast_to(w_ref[...].astype(x.dtype), (bn, 1, h))
    b = b_ref[0, 0]

    # logits on the MXU: (BN,1,H) x (BN,T,H) -> (BN,1,T); T ends up on the lane axis.
    logits = jnp.einsum(
        "bqh,bth->bqt", w, x,
        preferred_element_type=jnp.float32,
        precision=jax.lax.Precision.HIGHEST,
    ) + b                                                       # (BN, 1, T) f32

    # Numerically stable softmax over T (lane-dense reduces, EUP exp).
    m = jnp.max(logits, axis=-1, keepdims=True)                 # (BN, 1, 1)
    e = jnp.exp(logits - m)                                     # (BN, 1, T)
    denom = jnp.sum(e, axis=-1, keepdims=True)                  # (BN, 1, 1)
    # approx=False keeps full f32 accuracy for the strict test below; in bf16 serving
    # approx=True routes to the EUP approximate reciprocal essentially for free.
    att = e * pl.reciprocal(denom, approx=False)                # (BN, 1, T) f32

    # Weighted sum on the MXU: (BN,1,T) x (BN,T,H) -> (BN,1,H), f32 accumulation.
    pooled = jnp.einsum(
        "bqt,bth->bqh", att.astype(x.dtype), x,
        preferred_element_type=jnp.float32,
        precision=jax.lax.Precision.HIGHEST,
    )                                                           # (BN, 1, H)
    o_ref[...] = pooled.astype(o_ref.dtype)


def _choose_block_n(n, t, h, itemsize,
                    per_buffer_budget_bytes=12 * 1024 * 1024, max_bn=512):
    """Largest batch-block that keeps the (double-buffered) x tile within budget."""
    bytes_per_batch_elem = max(1, t * h * itemsize)
    cap = int(max(1, min(max_bn, per_buffer_budget_bytes // bytes_per_batch_elem)))
    if n <= cap:
        return n
    fallback = 1
    for bn in range(cap, 0, -1):
        if n % bn == 0:
            if bn % 8 == 0:            # prefer sublane-friendly block sizes
                return bn
            if fallback == 1:
                fallback = bn
    return fallback


def self_attention_pooling(x, w, b, *, block_n=None):
    """x: (N, T, H); w: (1, H) [nn.Linear(H,1).weight]; b: (1,) or (1,1). Returns (N, H)."""
    n, t, h = x.shape
    w3 = jnp.asarray(w).reshape(1, 1, h)                 # free layout fix, done once outside
    b2 = jnp.asarray(b).reshape(1, 1).astype(jnp.float32)

    bn = block_n if block_n is not None else _choose_block_n(n, t, h, x.dtype.itemsize)
    assert n % bn == 0, f"block_n={bn} must divide N={n}"
    grid = (n // bn,)

    # TODO(synk): for very large T add an inner "arbitrary" T grid axis with
    # online-softmax accumulators; current version keeps the full (T, H) slab per batch.
    out3 = pl.pallas_call(
        _sap_kernel,
        out_shape=jax.ShapeDtypeStruct((n, 1, h), x.dtype),
        grid_spec=pltpu.PrefetchScalarGridSpec(
            num_scalar_prefetch=0,
            grid=grid,
            in_specs=[
                pl.BlockSpec((bn, t, h), lambda i: (i, 0, 0)),        # BN batch rows per step
                pl.BlockSpec((1, 1, h), lambda i: (0, 0, 0)),         # weight (same block every step)
                pl.BlockSpec(memory_space=pltpu.MemorySpace.SMEM),    # scalar bias in SMEM
            ],
            out_specs=pl.BlockSpec((bn, 1, h), lambda i: (i, 0, 0)),
        ),
        compiler_params=pltpu.CompilerParams(
            dimension_semantics=("parallel",),        # v7x: split N across 2 TensorCores
            vmem_limit_bytes=48 * 1024 * 1024,        # > scoped defaults, < v7x 64 MiB physical
        ),
    )(x, w3, b2)
    return out3.reshape(n, h)                          # free (N,1,H)->(N,H) outside the kernel


def reference(x, w, b):
    logits = jnp.einsum("nth,oh->nto", x, w,
                        precision=jax.lax.Precision.HIGHEST) + jnp.asarray(b).reshape(())
    att = jax.nn.softmax(logits[..., 0], axis=-1)[..., None]
    return jnp.sum(x * att, axis=1)


if __name__ == "__main__":
    key = jax.random.PRNGKey(0)
    kx, kw, kb = jax.random.split(key, 3)

    N, T, H = 2, 8, 32
    x = jax.random.normal(kx, (N, T, H), dtype=jnp.float32)

    # Deterministic parameter init mimicking nn.Linear(H, 1): U(-1/sqrt(H), 1/sqrt(H))
    bound = 1.0 / (H ** 0.5)
    w = jax.random.uniform(kw, (1, H), minval=-bound, maxval=bound, dtype=jnp.float32)
    b = jax.random.uniform(kb, (1, 1), minval=-bound, maxval=bound, dtype=jnp.float32)

    out = jax.block_until_ready(self_attention_pooling(x, w, b))
    ref = jax.block_until_ready(reference(x, w, b))

    assert out.shape == (N, H)
    max_err = jnp.max(jnp.abs(out - ref))
    assert jnp.allclose(out, ref, atol=1e-4, rtol=1e-4), f"mismatch vs reference, max|err|={max_err}"

    print("KERNEL_OK")
</pallas_src>

<mosaic_0001>
module attributes {stable_mosaic.version = 11 : i64} {
  func.func @_sap_kernel(%arg0: i32, %arg1: memref<2x8x32xf32, #tpu.memory_space<vmem>>, %arg2: memref<1x1x32xf32, #tpu.memory_space<vmem>>, %arg3: memref<1x1xf32, #tpu.memory_space<smem>>, %arg4: memref<2x1x32xf32, #tpu.memory_space<vmem>>) attributes {dimension_semantics = [#tpu.dimension_semantics<parallel>], iteration_bounds = array<i64: 1>, scalar_prefetch = 0 : i64, scratch_operands = 0 : i64, tpu.core_type = #tpu.core_type<tc>, window_params = [{transform_indices = @transform_0, window_bounds = array<i64: 2, 8, 32>}, {pipeline_mode = #tpu.pipeline_mode<synchronous>, transform_indices = @transform_1, window_bounds = array<i64: 1, 1, 32>}, {transform_indices = @transform_2, window_bounds = array<i64: 1, 1>}, {transform_indices = @transform_3, window_bounds = array<i64: 2, 1, 32>}]} {
    %c0 = arith.constant 0 : index
    %c0_0 = arith.constant 0 : index
    %c0_1 = arith.constant 0 : index
    %0 = vector.load %arg1[%c0, %c0_0, %c0_1] : memref<2x8x32xf32, #tpu.memory_space<vmem>>, vector<2x8x32xf32>
    %c0_2 = arith.constant 0 : index
    %c0_3 = arith.constant 0 : index
    %c0_4 = arith.constant 0 : index
    %1 = vector.load %arg2[%c0_2, %c0_3, %c0_4] : memref<1x1x32xf32, #tpu.memory_space<vmem>>, vector<1x1x32xf32>
    %2 = vector.shape_cast %1 : vector<1x1x32xf32> to vector<1x1x32xf32>
    %3 = vector.broadcast %2 : vector<1x1x32xf32> to vector<2x1x32xf32>
    %c0_5 = arith.constant 0 : index
    %c0_6 = arith.constant 0 : index
    %4 = memref.load %arg3[%c0_5, %c0_6] : memref<1x1xf32, #tpu.memory_space<smem>>
    "tpu.trace_start"() <{level = 10 : i32, message = "bqh,bth->bqt"}> : () -> ()
    %cst = arith.constant dense<0.000000e+00> : vector<2x1x8xf32>
    %5 = tpu.matmul %3, %0, %cst {dimension_numbers = #tpu.dot_dimension_numbers<[2], [2], [1], [1], [0, 0, 0, 1, 1, 1], [0], [0]>, precision = #tpu.contract_precision<fp32>} : vector<2x1x32xf32>, vector<2x8x32xf32>, vector<2x1x8xf32> -> vector<2x1x8xf32>
    "tpu.trace_stop"() : () -> ()
    %6 = vector.broadcast %4 : f32 to vector<2x1x8xf32>
    %7 = arith.addf %5, %6 : vector<2x1x8xf32>
    %cst_7 = arith.constant dense<0xFF800000> : vector<2x1xf32>
    %8 = vector.multi_reduction <maximumf>, %7, %cst_7 [2] : vector<2x1x8xf32> to vector<2x1xf32>
    %9 = vector.shape_cast %8 : vector<2x1xf32> to vector<2x1x1xf32>
    %10 = vector.broadcast %9 : vector<2x1x1xf32> to vector<2x1x8xf32>
    %11 = arith.subf %7, %10 : vector<2x1x8xf32>
    %12 = math.exp %11 : vector<2x1x8xf32>
    %cst_8 = arith.constant dense<0.000000e+00> : vector<2x1xf32>
    %13 = vector.multi_reduction <add>, %12, %cst_8 [2] : vector<2x1x8xf32> to vector<2x1xf32>
    %14 = vector.shape_cast %13 : vector<2x1xf32> to vector<2x1x1xf32>
    %15 = tpu.reciprocal %14 : vector<2x1x1xf32> -> vector<2x1x1xf32>
    %16 = vector.broadcast %15 : vector<2x1x1xf32> to vector<2x1x8xf32>
    %17 = arith.mulf %12, %16 : vector<2x1x8xf32>
    "tpu.trace_start"() <{level = 10 : i32, message = "bqt,bth->bqh"}> : () -> ()
    %cst_9 = arith.constant dense<0.000000e+00> : vector<2x1x32xf32>
    %18 = tpu.matmul %17, %0, %cst_9 {dimension_numbers = #tpu.dot_dimension_numbers<[2], [1], [1], [2], [0, 0, 0, 1, 1, 2], [0], [0]>, precision = #tpu.contract_precision<fp32>} : vector<2x1x8xf32>, vector<2x8x32xf32>, vector<2x1x32xf32> -> vector<2x1x32xf32>
    "tpu.trace_stop"() : () -> ()
    %c0_10 = arith.constant 0 : index
    %c0_11 = arith.constant 0 : index
    %c0_12 = arith.constant 0 : index
    %19 = vector.load %arg4[%c0_10, %c0_11, %c0_12] : memref<2x1x32xf32, #tpu.memory_space<vmem>>, vector<2x1x32xf32>
    tpu.vector_store %arg4[%c0_10, %c0_11, %c0_12], %18 {strides = array<i32>} : memref<2x1x32xf32, #tpu.memory_space<vmem>>, vector<2x1x32xf32>,
    return
  }
  func.func @transform_0(%arg0: i32) -> (i32, i32, i32) {
    %c0_i32 = arith.constant 0 : i32
    %c0_i32_0 = arith.constant 0 : i32
    %c0_i32_1 = arith.constant 0 : i32
    return %arg0, %c0_i32, %c0_i32_0 : i32, i32, i32
  }
  func.func @transform_1(%arg0: i32) -> (i32, i32, i32) {
    %c0_i32 = arith.constant 0 : i32
    %c0_i32_0 = arith.constant 0 : i32
    %c0_i32_1 = arith.constant 0 : i32
    %c0_i32_2 = arith.constant 0 : i32
    return %c0_i32, %c0_i32_0, %c0_i32_1 : i32, i32, i32
  }
  func.func @transform_2(%arg0: i32) -> (i32, i32) {
    %c0_i32 = arith.constant 0 : i32
    %c0_i32_0 = arith.constant 0 : i32
    %c0_i32_1 = arith.constant 0 : i32
    return %c0_i32, %c0_i32_0 : i32, i32
  }
  func.func @transform_3(%arg0: i32) -> (i32, i32, i32) {
    %c0_i32 = arith.constant 0 : i32
    %c0_i32_0 = arith.constant 0 : i32
    %c0_i32_1 = arith.constant 0 : i32
    return %arg0, %c0_i32, %c0_i32_0 : i32, i32, i32
  }
}

</mosaic_0001>

<bundles_post_ra>
// kernel: tpu_custom_call.1
= control target key start
LH: loop header
LB: loop body
LE: loop exit
PB: predicated region body
PF: predicated region fallthrough
CT: control target
= control target key end

     0   :  { %9 = vsyncpa [#allocation4], 0  ;;  %s2309_s0 = inlined_call_operand.hbm [shape: f32[2,8,32], index: 0, kind: input, shape index: {}]   ;;  %s2310_s1 = inlined_call_operand.vmem [shape: f32[1,1,32], index: 1, kind: input, shape index: {}]   ;;  %s2311_s2 = inlined_call_operand.<no memory space> [shape: f32[1,1], index: 2, kind: input, shape index: {}]   ;;  %s2312_s3 = inlined_call_operand.hbm [shape: f32[2,1,32], index: 3, kind: output, shape index: {}]  }
   0x1   :  { %10 = vsyncpa [#allocation5], 0  ;;  %s2153_s12 = smov [#allocation3]   ;;  %s2105_s16 = scalar_lea.hbm %s2309_s0, 256 }
   0x2   :  { %s16_s13 = sshll.u32 %s2153_s12, 4  ;;  %p2106_p0 = scmp.ne.s32.totalorder %s2309_s0, %s2105_s16  ;;  %s17_s13 = int_to_ptr.vmem [resolvable:$true] %s16_s13 }
   0x3   :  { %p2109_p1 = scmp.lt.u32.totalorder %s2105_s16, %s2309_s0 }
   0x5   :  { %p2111_p2 = pnand %p2109_p1, %p2106_p0 }
   0x7   :  { %2114 = shalt.err (!%p2111_p2)
}
   0x8   :  { %s2115_s21 = scalar_lea.vmem %s17_s13, 256  ;;  %p2120_p4 = scmp.lt.s32.totalorder %s17_s13, %s17_s13 }
   0x9   :  { %p2116_p3 = scmp.ne.s32.totalorder %s17_s13, %s2115_s21  ;;  %p2121_p5 = scmp.lt.s32.totalorder %s2115_s21, %s2115_s21 }
   0xb   :  { %p2122_p6 = por %p2121_p5, %p2120_p4 }
   0xd   :  { %p2123_p7 = pnand %p2122_p6, %p2116_p3 }
   0xf   :  { %2126 = shalt.err (!%p2123_p7)
}
  0x10   :  { %s2154_s22 = smov 128   ;;  %s2155_s23 = smov 8  }
  0x11   :  { %22 = dma.hbm_to_vmem [thread:$0]  %s2309_s0, 256, %s17_s13, [#allocation4], %s2154_s22, %s2154_s22, %s2155_s23  }
  0x12   :  { %2149 = dma.done.wait [#allocation4], 256  }
  0x13   :  { %2150 = vsyncadd [#allocation4], 4294967040  ;;  %v2156_v0 = vmov 0.0   ;;  %vm2157_vm0 = vmmov 0   ;;  %vm35_vm1 = vcmask 261120   ;;  %v2199_v1 = vld [vmem:[#allocation3] sm:$0xff]  ;;  %v34_v22 = vstv %s2311_s2 }
  0x14   :  { %1927 = vmatprep.subr.mxu0 %v2156_v0  ;;  %1957 = vmatprep.subr.mxu1 %v2156_v0  ;;  %v32_v2 = vld [vmem:[%s2310_s1] sm:$0x1]  ;;  %v2204_v3 = vld [vmem:[#allocation3 + $0x8] sm:$0xff]  ;;  %v40_v5 = vsel %vm35_vm1, %v2199_v1, 0  ;;  %vm937_vm2 = vcmask 57344   ;;  %v2252_v41 = vand.u32 4294901760, %v2199_v1 }
  0x15   :  { %1929 = vmatprep.mubr.msk.f32.mxu0 %vm2157_vm0, %v2156_v0  ;;  %1959 = vmatprep.mubr.msk.f32.mxu1 %vm2157_vm0, %v2156_v0  ;;  %v37_v4 = vsel %vm35_vm1, %v32_v2, 0  ;;  %v489_v6 = vsel %vm35_vm1, %v2204_v3, 0  ;;  %v43_v7 = vand.u32 4294901760, %v40_v5  ;;  %v2257_v42 = vand.u32 4294901760, %v2204_v3  ;;  %s2158_s2 = smov [#allocation6]  }
  0x16   :  { %v108_v8 = vand.u32 4294901760, %v37_v4  ;;  %v492_v9 = vand.u32 4294901760, %v489_v6  ;;  %v1042_v45 = vsub.f32 %v2199_v1, %v2252_v41  ;;  %vm960_vm3 = vcmask 64512   ;;  %s1867_s28 = sshll.u32 %s2158_s2, 4  ;;  %s1868_s28 = int_to_ptr.vmem [resolvable:$true] %s1867_s28 }
  0x17   :  { %1928 = vmatpush3.xpose.msra.mxu0 %v43_v7  ;;  %v120_v10 = vsub.f32 %v40_v5, %v43_v7  ;;  %v1491_v50 = vsub.f32 %v2204_v3, %v2257_v42  ;;  %vm1859_vm4 = vcmask 253952   ;;  %s2127_s29 = scalar_lea.vmem %s1868_s28, 32  ;;  %p2132_p9 = scmp.lt.s32.totalorder %s1868_s28, %s1868_s28 }
  0x18   :  { %1958 = vmatpush3.xpose.msra.mxu1 %v492_v9  ;;  %v569_v11 = vsub.f32 %v489_v6, %v492_v9  ;;  %v109_v12 = vsub.f32 %v37_v4, %v108_v8  ;;  %1932 = vmatprep.subr.mxu0 %v2156_v0  ;;  %v1043_v49 = vand.u32 4294901760, %v1042_v45  ;;  %p2128_p8 = scmp.ne.s32.totalorder %s1868_s28, %s2127_s29  ;;  %p2133_p10 = scmp.lt.s32.totalorder %s2127_s29, %s2127_s29 }
  0x19   :  { %1962 = vmatprep.subr.mxu1 %v2156_v0  ;;  %v121_v14 = vand.u32 4294901760, %v120_v10  ;;  %v1492_v57 = vand.u32 4294901760, %v1491_v50 }
  0x1a   :  { %v110_v13 = vand.u32 4294901760, %v109_v12  ;;  %v570_v15 = vand.u32 4294901760, %v569_v11  ;;  %v1044_v56 = vsub.f32 %v1042_v45, %v1043_v49  ;;  %p2134_p11 = por %p2133_p10, %p2132_p9 }
  0x1b   :  { %v122_v17 = vsub.f32 %v120_v10, %v121_v14  ;;  %v1493_v63 = vsub.f32 %v1491_v50, %v1492_v57 }
  0x1c   :  { %v111_v16 = vsub.f32 %v109_v12, %v110_v13  ;;  %v571_v18 = vsub.f32 %v569_v11, %v570_v15  ;;  %v1045_v62 = vand.u32 4294901760, %v1044_v56  ;;  %p2135_p12 = pnand %p2134_p11, %p2128_p8 }
  0x1d   :  { %v123_v20 = vand.u32 4294901760, %v122_v17  ;;  %v1494_v5 = vand.u32 4294901760, %v1493_v63 }
  0x1e   :  { %v112_v19 = vand.u32 4294901760, %v111_v16  ;;  %v572_v21 = vand.u32 4294901760, %v571_v18 }
  0x20   :  { %1930 = vmatmul.mubr.f32.vlgmr.msra.gmra.mrb[0].mxu0 %v112_v19  ;;  %1960 = vmatmul.mubr.f32.vlgmr.msra.gmra.mrb[0].mxu1 %v112_v19 }
  0x21   :  { %1933 = vmatpush3.xpose.msra.mxu0 %v123_v20  ;;  %1963 = vmatpush3.xpose.msra.mxu1 %v572_v21 }
  0x22   :  { %1934 = vmatprep.mubr.msk.f32.mxu0 %vm2157_vm0, %v2156_v0  ;;  %1937 = vmatprep.subr.mxu0 %v2156_v0 }
  0x23   :  { %1964 = vmatprep.mubr.msk.f32.mxu1 %vm2157_vm0, %v2156_v0  ;;  %1967 = vmatprep.subr.mxu1 %v2156_v0 }
  0x28   :  { %1935 = vmatmul.mubr.f32.vlgmr.msra.gmra.mrb[0].mxu0 %v108_v8  ;;  %1965 = vmatmul.mubr.f32.vlgmr.msra.gmra.mrb[0].mxu1 %v108_v8 }
  0x29   :  { %1938 = vmatpush3.xpose.msra.mxu0 %v120_v10  ;;  %1968 = vmatpush3.xpose.msra.mxu1 %v569_v11 }
  0x2a   :  { %1939 = vmatprep.mubr.msk.f32.mxu0 %vm2157_vm0, %v2156_v0  ;;  %1942 = vmatprep.subr.mxu0 %v2156_v0 }
  0x2b   :  { %1969 = vmatprep.mubr.msk.f32.mxu1 %vm2157_vm0, %v2156_v0  ;;  %1972 = vmatprep.subr.mxu1 %v2156_v0 }
  0x30   :  { %1940 = vmatmul.mubr.f32.vlgmr.msra.gmra.mrb[0].mxu0 %v109_v12  ;;  %1970 = vmatmul.mubr.f32.vlgmr.msra.gmra.mrb[0].mxu1 %v109_v12 }
  0x31   :  { %1943 = vmatpush3.xpose.msra.mxu0 %v43_v7  ;;  %1973 = vmatpush3.xpose.msra.mxu1 %v492_v9 }
  0x32   :  { %1944 = vmatprep.mubr.msk.f32.mxu0 %vm2157_vm0, %v2156_v0  ;;  %1947 = vmatprep.subr.mxu0 %v2156_v0 }
  0x33   :  { %1974 = vmatprep.mubr.msk.f32.mxu1 %vm2157_vm0, %v2156_v0  ;;  %1977 = vmatprep.subr.mxu1 %v2156_v0 }
  0x38   :  { %1945 = vmatmul.mubr.f32.vlgmr.msra.gmra.mrb[0].mxu0 %v110_v13  ;;  %1975 = vmatmul.mubr.f32.vlgmr.msra.gmra.mrb[0].mxu1 %v110_v13 }
  0x39   :  { %1948 = vmatpush3.xpose.msra.mxu0 %v121_v14  ;;  %1978 = vmatpush3.xpose.msra.mxu1 %v570_v15 }
  0x3a   :  { %1949 = vmatprep.mubr.msk.f32.mxu0 %vm2157_vm0, %v2156_v0  ;;  %1952 = vmatprep.subr.mxu0 %v2156_v0 }
  0x3b   :  { %1979 = vmatprep.mubr.msk.f32.mxu1 %vm2157_vm0, %v2156_v0  ;;  %1982 = vmatprep.subr.mxu1 %v2156_v0 }
  0x40   :  { %1950 = vmatmul.mubr.f32.vlgmr.msra.gmra.mrb[0].mxu0 %v108_v8  ;;  %1980 = vmatmul.mubr.f32.vlgmr.msra.gmra.mrb[0].mxu1 %v108_v8 }
  0x41   :  { %1953 = vmatpush3.xpose.msra.mxu0 %v43_v7  ;;  %1983 = vmatpush3.xpose.msra.mxu1 %v492_v9 }
  0x42   :  { %1954 = vmatprep.mubr.msk.f32.mxu0 %vm2157_vm0, %v2156_v0  ;;  %1984 = vmatprep.mubr.msk.f32.mxu1 %vm2157_vm0, %v2156_v0 }
  0x43   :  { %1987 = vmatprep.subr.mxu0 %v2156_v0  ;;  %2017 = vmatprep.subr.mxu1 %v2156_v0 }
  0x48   :  { %1955 = vmatmul.mubr.f32.vlgmr.msra.gmra.mrb[0].mxu0 %v108_v8  ;;  %1985 = vmatmul.mubr.f32.vlgmr.msra.gmra.mrb[0].mxu1 %v108_v8 }
  0x49   :  { %1989 = vmatprep.mubr.msk.f32.mxu0 %vm2157_vm0, %v2156_v0  ;;  %2019 = vmatprep.mubr.msk.f32.mxu1 %vm2157_vm0, %v2156_v0 }
  0x4a   :  { %1988 = vmatpush3.msra.mxu0 %v2252_v41  ;;  %2018 = vmatpush3.msra.mxu1 %v2257_v42 }
  0x4b   :  { %1992 = vmatprep.subr.mxu0 %v2156_v0  ;;  %2022 = vmatprep.subr.mxu1 %v2156_v0 }
 0x11b   :  { %v484_v23 = vpop.f32.mrb[0].mxu0  ;;  %v933_v24 = vpop.f32.mrb[0].mxu1 }
 0x11c   :  { %v2047_v25 = vadd.f32 %v484_v23, %v34_v22  ;;  %v1956_v26 = vpop.f32.mrb[1].mxu0  ;;  %v1986_v27 = vpop.f32.mrb[1].mxu1  ;;  %v2048_v28 = vadd.f32 %v933_v24, %v34_v22 }
 0x11e   :  { %v938_v29 = vsel %vm937_vm2, %v2047_v25, -inf  ;;  %v941_v30 = vsel %vm937_vm2, %v2048_v28, -inf }
 0x11f   :  { %939 = vmax.xlane.f32.xlu0 %v938_v29 }
 0x123   :  { %942 = vmax.xlane.f32.xlu0 %v941_v30 }
 0x1ac   :  { %v940_v31 = vpop.xlane.xlu0 %939 }
 0x1ad   :  { %v944_v32 = vsub.f32 %v2047_v25, %v940_v31 }
 0x1af   :  { %v946_v33 = vmul.f32 1.442695, %v944_v32 }
 0x1b0   :  { %v943_v34 = vpop.xlane.xlu0 %942 }
 0x1b1   :  { %2097 = vpow2.f32 %v946_v33  ;;  %v945_v35 = vsub.f32 %v2048_v28, %v943_v34 }
 0x1b3   :  { %v948_v36 = vmul.f32 1.442695, %v945_v35 }
 0x1b5   :  { %2099 = vpow2.f32 %v948_v36 }
 0x1bb   :  { %v2098_v37 = vpop.eup %2097 }
 0x1bc   :  { %v950_v38 = vsel %vm937_vm2, %v2098_v37, 0.0 }
 0x1bd   :  { %951 = vadd.xlane.f32.xlu1 %v950_v38 }
 0x1bf   :  { %v2100_v39 = vpop.eup %2099 }
 0x1c0   :  { %v953_v40 = vsel %vm937_vm2, %v2100_v39, 0.0 }
 0x1c1   :  { %954 = vadd.xlane.f32.xlu1 %v953_v40 }
 0x24a   :  { %v952_v43 = vpop.xlane.xlu1 %951 }
 0x24b   :  { %2101 = vrcp.f32 %v952_v43 }
 0x24e   :  { %v955_v44 = vpop.xlane.xlu1 %954 }
 0x24f   :  { %2103 = vrcp.f32 %v955_v44 }
 0x255   :  { %v2102_v46 = vpop.eup %2101 }
 0x256   :  { %v958_v47 = vmul.f32 %v2102_v46, %v2098_v37 }
 0x258   :  { %v962_v48 = vsel %vm960_vm3, %v958_v47, 0 }
 0x259   :  { %v2104_v51 = vpop.eup %2103  ;;  %v1030_v52 = vand.u32 4294901760, %v962_v48 }
 0x25a   :  { %v959_v53 = vmul.f32 %v2104_v51, %v2100_v39 }
 0x25b   :  { %v1031_v54 = vsub.f32 %v962_v48, %v1030_v52 }
 0x25c   :  { %v1411_v55 = vsel %vm960_vm3, %v959_v53, 0 }
 0x25d   :  { %v1479_v58 = vand.u32 4294901760, %v1411_v55  ;;  %v1032_v59 = vand.u32 4294901760, %v1031_v54 }
 0x25f   :  { %v1033_v60 = vsub.f32 %v1031_v54, %v1032_v59  ;;  %v1480_v61 = vsub.f32 %v1411_v55, %v1479_v58 }
 0x261   :  { %v1034_v1 = vand.u32 4294901760, %v1033_v60  ;;  %v1481_v2 = vand.u32 4294901760, %v1480_v61 }
 0x263   :  { %1990 = vmatmul.mubr.f32.vlgmr.msra.gmra.mrb[2].mxu0 %v1034_v1  ;;  %v1482_v4 = vsub.f32 %v1480_v61, %v1481_v2 }
 0x264   :  { %1993 = vmatpush3.msra.mxu0 %v1045_v62  ;;  %1994 = vmatprep.mubr.msk.f32.mxu0 %vm2157_vm0, %v2156_v0 }
 0x265   :  { %v1483_v3 = vand.u32 4294901760, %v1482_v4  ;;  %1997 = vmatprep.subr.mxu0 %v2156_v0 }
 0x267   :  { %2020 = vmatmul.mubr.f32.vlgmr.msra.gmra.mrb[2].mxu1 %v1483_v3 }
 0x268   :  { %2023 = vmatpush3.msra.mxu1 %v1494_v5  ;;  %2024 = vmatprep.mubr.msk.f32.mxu1 %vm2157_vm0, %v2156_v0 }
 0x269   :  { %2027 = vmatprep.subr.mxu1 %v2156_v0 }
 0x26b   :  { %1995 = vmatmul.mubr.f32.vlgmr.msra.gmra.mrb[2].mxu0 %v1030_v52 }
 0x26c   :  { %1998 = vmatpush3.msra.mxu0 %v1042_v45  ;;  %1999 = vmatprep.mubr.msk.f32.mxu0 %vm2157_vm0, %v2156_v0 }
 0x26d   :  { %2002 = vmatprep.subr.mxu0 %v2156_v0 }
 0x26f   :  { %2025 = vmatmul.mubr.f32.vlgmr.msra.gmra.mrb[2].mxu1 %v1479_v58 }
 0x270   :  { %2028 = vmatpush3.msra.mxu1 %v1491_v50  ;;  %2029 = vmatprep.mubr.msk.f32.mxu1 %vm2157_vm0, %v2156_v0 }
 0x271   :  { %2032 = vmatprep.subr.mxu1 %v2156_v0 }
 0x273   :  { %2000 = vmatmul.mubr.f32.vlgmr.msra.gmra.mrb[2].mxu0 %v1031_v54 }
 0x274   :  { %2003 = vmatpush3.msra.mxu0 %v2252_v41  ;;  %2004 = vmatprep.mubr.msk.f32.mxu0 %vm2157_vm0, %v2156_v0 }
 0x275   :  { %2007 = vmatprep.subr.mxu0 %v2156_v0 }
 0x277   :  { %2030 = vmatmul.mubr.f32.vlgmr.msra.gmra.mrb[2].mxu1 %v1480_v61 }
 0x278   :  { %2033 = vmatpush3.msra.mxu1 %v2257_v42  ;;  %2034 = vmatprep.mubr.msk.f32.mxu1 %vm2157_vm0, %v2156_v0 }
 0x279   :  { %2037 = vmatprep.subr.mxu1 %v2156_v0 }
 0x27b   :  { %2005 = vmatmul.mubr.f32.vlgmr.msra.gmra.mrb[2].mxu0 %v1032_v59 }
 0x27c   :  { %2008 = vmatpush3.msra.mxu0 %v1043_v49  ;;  %2009 = vmatprep.mubr.msk.f32.mxu0 %vm2157_vm0, %v2156_v0 }
 0x27d   :  { %2012 = vmatprep.subr.mxu0 %v2156_v0 }
 0x27f   :  { %2035 = vmatmul.mubr.f32.vlgmr.msra.gmra.mrb[2].mxu1 %v1481_v2 }
 0x280   :  { %2038 = vmatpush3.msra.mxu1 %v1492_v57  ;;  %2039 = vmatprep.mubr.msk.f32.mxu1 %vm2157_vm0, %v2156_v0 }
 0x281   :  { %2042 = vmatprep.subr.mxu1 %v2156_v0 }
 0x283   :  { %2010 = vmatmul.mubr.f32.vlgmr.msra.gmra.mrb[2].mxu0 %v1030_v52 }
 0x284   :  { %2013 = vmatpush3.msra.mxu0 %v2252_v41  ;;  %2014 = vmatprep.mubr.msk.f32.mxu0 %vm2157_vm0, %v2156_v0 }
 0x287   :  { %2040 = vmatmul.mubr.f32.vlgmr.msra.gmra.mrb[2].mxu1 %v1479_v58 }
 0x288   :  { %2043 = vmatpush3.msra.mxu1 %v2257_v42  ;;  %2044 = vmatprep.mubr.msk.f32.mxu1 %vm2157_vm0, %v2156_v0 }
 0x28b   :  { %2015 = vmatmul.mubr.f32.vlgmr.msra.gmra.mrb[2].mxu0 %v1030_v52 }
 0x28f   :  { %2045 = vmatmul.mubr.f32.vlgmr.msra.gmra.mrb[2].mxu1 %v1479_v58 }
 0x35e   :  { %v1406_v6 = vpop.f32.mrb[2].mxu0 }
 0x35f   :  { %1860 = vst.msk [vmem:[#allocation6] sm:$0x1] %vm1859_vm4, %v1406_v6  ;;  %v2016_v7 = vpop.f32.mrb[3].mxu0 }
 0x362   :  { %v1855_v8 = vpop.f32.mrb[2].mxu1 }
 0x363   :  { %1861 = vst.msk [vmem:[#allocation6 + $0x1] sm:$0x1] %vm1859_vm4, %v1855_v8  ;;  %v2046_v9 = vpop.f32.mrb[3].mxu1 }
 0x364   :  { %2138 = shalt.err (!%p2135_p12)
}
 0x365   :  { %s2139_s5 = scalar_lea.hbm %s2312_s3, 32 }
 0x366   :  { %p2140_p13 = scmp.ne.s32.totalorder %s2312_s3, %s2139_s5  ;;  %p2143_p0 = scmp.lt.u32.totalorder %s2139_s5, %s2312_s3 }
 0x368   :  { %p2145_p1 = pnand %p2143_p0, %p2140_p13 }
 0x36a   :  { %2148 = shalt.err (!%p2145_p1)
}
 0x36b   :  { %s2159_s10 = smov 16   ;;  %s2160_s11 = smov 1  }
 0x36c   :  { %1873 = dma.vmem_to_hbm [thread:$0]  %s1868_s28, 32, %s2312_s3, [#allocation5], %s2159_s10, %s2159_s10, %s2160_s11  }
 0x36d   :  { %2151 = dma.done.wait [#allocation5], 32  }
 0x36e   :  { %2152 = vsyncadd [#allocation5], 4294967264 }
 0x36f   :  { %1877 = vsyncpa [#allocation4], 1 }
 0x370   :  { %1878 = vsyncpa [#allocation5], 1 }

</bundles_post_ra>
